<compile_context>
chip_gen: v6e
topology: v6e:2x2x1
jax: 0.10.0
libtpu: 0.0.40
codegen_flags: <defaults>
</compile_context>

<pallas_src>
import functools

import jax
import jax.numpy as jnp
from jax.experimental import pallas as pl
from jax.experimental.pallas import tpu as pltpu


_INV_SQRT2 = 0.7071067811865476


def _mlp_kernel(x_ref, w1_ref, b1_ref, w2_ref, b2_ref, o_ref, acc_ref):
    # x_ref  : (tm, Dp)   bf16 input-row tile (resident across the H axis)
    # w1_ref : (Dp, tH)   bf16 first-linear weight chunk
    # b1_ref : (1, tH)    f32 first-linear bias chunk
    # w2_ref : (tH, Dp)   bf16 second-linear weight chunk
    # b2_ref : (1, Dp)    f32 second-linear bias
    # o_ref  : (tm, Dp)   output tile (written on the last H step)
    # acc_ref: (tm, Dp)   f32 accumulator scratch
    j = pl.program_id(1)

    @pl.when(j == 0)
    def _():
        acc_ref[...] = jnp.zeros_like(acc_ref)

    # dense_1 on this H-chunk: bf16 operands, f32 accumulation on the MXU
    h = jnp.dot(x_ref[...], w1_ref[...], preferred_element_type=jnp.float32)
    h = h + b1_ref[...]

    # exact (erf-based) GELU in f32, matching torch.nn.GELU() default
    h = 0.5 * h * (1.0 + jax.lax.erf(h * jnp.float32(_INV_SQRT2)))

    # dense_2 partial product for this H-chunk, accumulated in f32
    acc_ref[...] += jnp.dot(h.astype(w2_ref.dtype), w2_ref[...],
                            preferred_element_type=jnp.float32)

    @pl.when(j == pl.num_programs(1) - 1)
    def _():
        # TODO(synk): nn.Dropout is identity in eval mode; training-mode masking
        # would use pltpu.prng_seed / pltpu.prng_random_bits here.
        o_ref[...] = (acc_ref[...] + b2_ref[...]).astype(o_ref.dtype)


def _round_up(x, m):
    return (x + m - 1) // m * m


@functools.partial(jax.jit, static_argnames=("block_rows", "block_h"))
def mlp_forward(x, w1, b1, w2, b2, *, block_rows=None, block_h=None):
    """x: [B, N, D]; w1: [D, H]; b1: [H]; w2: [H, D]; b2: [D]."""
    B, N, D = x.shape
    H = w1.shape[1]
    rows = B * N

    # --- TPU-friendly padded shapes (lane dim multiple of 128) -------------
    Dp = _round_up(D, 128)

    # Row tile: 256 keeps the DMA/compute pipeline full at ViT scale; for tiny
    # inputs just round the row count up to the bf16 sublane packing (16).
    if block_rows is None:
        block_rows = 256 if rows >= 256 else _round_up(rows, 16)
    assert block_rows % 16 == 0, "block_rows must be a multiple of 16 (bf16 sublanes)"
    rows_p = _round_up(rows, block_rows)

    # Hidden-dim tile: caps weight + GELU-intermediate VMEM residency
    # (critical on v7x's 64 MiB VMEM at H=3072..4096).
    if block_h is None:
        block_h = min(_round_up(H, 128), 512)
    assert block_h % 128 == 0, "block_h must be a multiple of 128"
    Hp = _round_up(H, block_h)

    # --- bf16 matmul operands (MXU native); biases / accumulation stay f32 --
    # Zero padding is exact: padded H columns give GELU(0)=0 and padded D
    # rows/cols contribute zero; padded output rows/cols are sliced off.
    x2d = jnp.pad(x.reshape(rows, D).astype(jnp.bfloat16),
                  ((0, rows_p - rows), (0, Dp - D)))
    w1p = jnp.pad(w1.astype(jnp.bfloat16), ((0, Dp - D), (0, Hp - H)))
    w2p = jnp.pad(w2.astype(jnp.bfloat16), ((0, Hp - H), (0, Dp - D)))
    b1p = jnp.pad(b1.astype(jnp.float32), (0, Hp - H)).reshape(1, Hp)
    b2p = jnp.pad(b2.astype(jnp.float32), (0, Dp - D)).reshape(1, Dp)

    grid = (rows_p // block_rows, Hp // block_h)

    cost = pl.CostEstimate(
        flops=4 * rows_p * Dp * Hp,                      # two matmuls
        transcendentals=rows_p * Hp,                     # erf
        bytes_accessed=(x2d.size * 2 + w1p.size * 2 + w2p.size * 2
                        + b1p.size * 4 + b2p.size * 4
                        + rows_p * Dp * x.dtype.itemsize),
    )

    out2d = pl.pallas_call(
        _mlp_kernel,
        out_shape=jax.ShapeDtypeStruct((rows_p, Dp), x.dtype),
        grid_spec=pltpu.PrefetchScalarGridSpec(
            num_scalar_prefetch=0,
            grid=grid,
            in_specs=[
                pl.BlockSpec((block_rows, Dp), lambda i, j: (i, 0)),  # x tile
                pl.BlockSpec((Dp, block_h), lambda i, j: (0, j)),     # w1 chunk
                pl.BlockSpec((1, block_h), lambda i, j: (0, j)),      # b1 chunk
                pl.BlockSpec((block_h, Dp), lambda i, j: (j, 0)),     # w2 chunk
                pl.BlockSpec((1, Dp), lambda i, j: (0, 0)),           # b2
            ],
            out_specs=pl.BlockSpec((block_rows, Dp), lambda i, j: (i, 0)),
            scratch_shapes=[pltpu.VMEM((block_rows, Dp), jnp.float32)],
        ),
        compiler_params=pltpu.CompilerParams(
            dimension_semantics=("parallel", "arbitrary"),
            vmem_limit_bytes=48 * 1024 * 1024,
        ),
        cost_estimate=cost,
    )(x2d, w1p, b1p, w2p, b2p)

    return out2d[:rows, :D].reshape(B, N, D)


def _reference_bf16(x, w1, b1, w2, b2):
    # Matches the kernel's numerics: bf16 matmul operands, f32 accumulation.
    h = jnp.einsum("bnd,dh->bnh", x.astype(jnp.bfloat16), w1.astype(jnp.bfloat16),
                   preferred_element_type=jnp.float32) + b1
    h = 0.5 * h * (1.0 + jax.lax.erf(h * jnp.float32(_INV_SQRT2)))
    y = jnp.einsum("bnh,hd->bnd", h.astype(jnp.bfloat16), w2.astype(jnp.bfloat16),
                   preferred_element_type=jnp.float32) + b2
    return y.astype(x.dtype)


def _reference_f32(x, w1, b1, w2, b2):
    h = jnp.einsum("bnd,dh->bnh", x, w1) + b1
    h = 0.5 * h * (1.0 + jax.lax.erf(h * jnp.float32(_INV_SQRT2)))
    return jnp.einsum("bnh,hd->bnd", h, w2) + b2


if __name__ == "__main__":
    # Small, lane-dense shapes consistent with the module (dim=128, hidden=256).
    B, N, D, H = 2, 128, 128, 256

    key = jax.random.PRNGKey(0)
    kx, k1, kb1, k2, kb2 = jax.random.split(key, 5)

    x = jax.random.normal(kx, (B, N, D), dtype=jnp.float32)

    # Deterministic parameter init (mimics nn.Linear's uniform fan-in init)
    lim1 = 1.0 / jnp.sqrt(jnp.float32(D))
    lim2 = 1.0 / jnp.sqrt(jnp.float32(H))
    w1 = jax.random.uniform(k1, (D, H), jnp.float32, -lim1, lim1)   # (in, out)
    b1 = jax.random.uniform(kb1, (H,), jnp.float32, -lim1, lim1)
    w2 = jax.random.uniform(k2, (H, D), jnp.float32, -lim2, lim2)   # (in, out)
    b2 = jax.random.uniform(kb2, (D,), jnp.float32, -lim2, lim2)

    # Explicit small tiles -> exercises both grid axes (2 row tiles x 2 H tiles,
    # accumulator init/finalize path).
    out = mlp_forward(x, w1, b1, w2, b2, block_rows=128, block_h=128)
    out = jax.block_until_ready(out)

    # Default tiling path.
    out_default = mlp_forward(x, w1, b1, w2, b2)
    out_default = jax.block_until_ready(out_default)

    ref_bf16 = _reference_bf16(x, w1, b1, w2, b2)
    ref_f32 = _reference_f32(x, w1, b1, w2, b2)

    assert out.shape == (B, N, D)
    assert jnp.allclose(out, ref_bf16, atol=1e-4, rtol=1e-4), \
        "mismatch vs bf16-matched reference"
    assert jnp.allclose(out_default, ref_bf16, atol=1e-4, rtol=1e-4), \
        "default-tiling mismatch vs bf16-matched reference"
    assert jnp.allclose(out, ref_f32, atol=3e-2, rtol=3e-2), \
        "mismatch vs f32 reference"

    print("KERNEL_OK")
</pallas_src>

<mosaic_0001>
module attributes {stable_mosaic.version = 11 : i64} {
  func.func @_mlp_kernel(%arg0: i32, %arg1: i32, %arg2: memref<128x128xbf16, #tpu.memory_space<vmem>>, %arg3: memref<128x128xbf16, #tpu.memory_space<vmem>>, %arg4: memref<1x128xf32, #tpu.memory_space<vmem>>, %arg5: memref<128x128xbf16, #tpu.memory_space<vmem>>, %arg6: memref<1x128xf32, #tpu.memory_space<vmem>>, %arg7: memref<128x128xf32, #tpu.memory_space<vmem>>, %arg8: memref<128x128xf32, #tpu.memory_space<vmem>>) attributes {dimension_semantics = [#tpu.dimension_semantics<parallel>, #tpu.dimension_semantics<arbitrary>], iteration_bounds = array<i64: 2, 2>, scalar_prefetch = 0 : i64, scratch_operands = 1 : i64, tpu.core_type = #tpu.core_type<tc>, window_params = [{transform_indices = @transform_0, window_bounds = array<i64: 128, 128>}, {transform_indices = @transform_1, window_bounds = array<i64: 128, 128>}, {transform_indices = @transform_2, window_bounds = array<i64: 1, 128>}, {transform_indices = @transform_3, window_bounds = array<i64: 128, 128>}, {pipeline_mode = #tpu.pipeline_mode<synchronous>, transform_indices = @transform_4, window_bounds = array<i64: 1, 128>}, {transform_indices = @transform_5, window_bounds = array<i64: 128, 128>}]} {
    %c0_i32 = arith.constant 0 : i32
    %0 = arith.cmpi eq, %arg1, %c0_i32 : i32
    %1 = arith.extui %0 : i1 to i32
    %c0_i32_0 = arith.constant 0 : i32
    %2 = arith.cmpi ne, %1, %c0_i32_0 : i32
    scf.if %2 {
      %cst_17 = arith.constant 0.000000e+00 : f32
      %26 = vector.broadcast %cst_17 : f32 to vector<128x128xf32>
      %c0_18 = arith.constant 0 : index
      %c0_19 = arith.constant 0 : index
      %27 = vector.load %arg8[%c0_18, %c0_19] : memref<128x128xf32, #tpu.memory_space<vmem>>, vector<128x128xf32>
      tpu.vector_store %arg8[%c0_18, %c0_19], %26 {strides = array<i32>} : memref<128x128xf32, #tpu.memory_space<vmem>>, vector<128x128xf32>,
    } else {
    }
    %c0 = arith.constant 0 : index
    %c0_1 = arith.constant 0 : index
    %3 = vector.load %arg2[%c0, %c0_1] : memref<128x128xbf16, #tpu.memory_space<vmem>>, vector<128x128xbf16>
    %c0_2 = arith.constant 0 : index
    %c0_3 = arith.constant 0 : index
    %4 = vector.load %arg3[%c0_2, %c0_3] : memref<128x128xbf16, #tpu.memory_space<vmem>>, vector<128x128xbf16>
    %cst = arith.constant dense<0.000000e+00> : vector<128x128xf32>
    %5 = tpu.matmul %3, %4, %cst {dimension_numbers = #tpu.dot_dimension_numbers<[1], [0], [0], [1], [0, 0, 1, 1], [], []>} : vector<128x128xbf16>, vector<128x128xbf16>, vector<128x128xf32> -> vector<128x128xf32>
    %c0_4 = arith.constant 0 : index
    %c0_5 = arith.constant 0 : index
    %6 = vector.load %arg4[%c0_4, %c0_5] : memref<1x128xf32, #tpu.memory_space<vmem>>, vector<1x128xf32>
    %7 = vector.broadcast %6 : vector<1x128xf32> to vector<128x128xf32>
    %8 = arith.addf %5, %7 : vector<128x128xf32>
    %cst_6 = arith.constant 5.000000e-01 : f32
    %9 = vector.broadcast %cst_6 : f32 to vector<128x128xf32>
    %10 = arith.mulf %9, %8 : vector<128x128xf32>
    %cst_7 = arith.constant 0.707106769 : f32
    %11 = vector.broadcast %cst_7 : f32 to vector<128x128xf32>
    %12 = arith.mulf %8, %11 : vector<128x128xf32>
    %13 = math.erf %12 : vector<128x128xf32>
    %cst_8 = arith.constant 1.000000e+00 : f32
    %14 = vector.broadcast %cst_8 : f32 to vector<128x128xf32>
    %15 = arith.addf %14, %13 : vector<128x128xf32>
    %16 = arith.mulf %10, %15 : vector<128x128xf32>
    %c0_9 = arith.constant 0 : index
    %c0_10 = arith.constant 0 : index
    %17 = vector.load %arg8[%c0_9, %c0_10] : memref<128x128xf32, #tpu.memory_space<vmem>>, vector<128x128xf32>
    %18 = arith.truncf %16 : vector<128x128xf32> to vector<128x128xbf16>
    %c0_11 = arith.constant 0 : index
    %c0_12 = arith.constant 0 : index
    %19 = vector.load %arg5[%c0_11, %c0_12] : memref<128x128xbf16, #tpu.memory_space<vmem>>, vector<128x128xbf16>
    %cst_13 = arith.constant dense<0.000000e+00> : vector<128x128xf32>
    %20 = tpu.matmul %18, %19, %cst_13 {dimension_numbers = #tpu.dot_dimension_numbers<[1], [0], [0], [1], [0, 0, 1, 1], [], []>} : vector<128x128xbf16>, vector<128x128xbf16>, vector<128x128xf32> -> vector<128x128xf32>
    %21 = arith.addf %17, %20 : vector<128x128xf32>
    %c0_14 = arith.constant 0 : index
    %c0_15 = arith.constant 0 : index
    %22 = vector.load %arg8[%c0_14, %c0_15] : memref<128x128xf32, #tpu.memory_space<vmem>>, vector<128x128xf32>
    tpu.vector_store %arg8[%c0_14, %c0_15], %21 {strides = array<i32>} : memref<128x128xf32, #tpu.memory_space<vmem>>, vector<128x128xf32>,
    %c1_i32 = arith.constant 1 : i32
    %23 = arith.cmpi eq, %arg1, %c1_i32 : i32
    %24 = arith.extui %23 : i1 to i32
    %c0_i32_16 = arith.constant 0 : i32
    %25 = arith.cmpi ne, %24, %c0_i32_16 : i32
    scf.if %25 {
      %c0_17 = arith.constant 0 : index
      %c0_18 = arith.constant 0 : index
      %26 = vector.load %arg8[%c0_17, %c0_18] : memref<128x128xf32, #tpu.memory_space<vmem>>, vector<128x128xf32>
      %c0_19 = arith.constant 0 : index
      %c0_20 = arith.constant 0 : index
      %27 = vector.load %arg6[%c0_19, %c0_20] : memref<1x128xf32, #tpu.memory_space<vmem>>, vector<1x128xf32>
      %28 = vector.broadcast %27 : vector<1x128xf32> to vector<128x128xf32>
      %29 = arith.addf %26, %28 : vector<128x128xf32>
      %c0_21 = arith.constant 0 : index
      %c0_22 = arith.constant 0 : index
      %30 = vector.load %arg7[%c0_21, %c0_22] : memref<128x128xf32, #tpu.memory_space<vmem>>, vector<128x128xf32>
      tpu.vector_store %arg7[%c0_21, %c0_22], %29 {strides = array<i32>} : memref<128x128xf32, #tpu.memory_space<vmem>>, vector<128x128xf32>,
    } else {
    }
    return
  }
  func.func @transform_0(%arg0: i32, %arg1: i32) -> (i32, i32) {
    %c0_i32 = arith.constant 0 : i32
    %c0_i32_0 = arith.constant 0 : i32
    return %arg0, %c0_i32 : i32, i32
  }
  func.func @transform_1(%arg0: i32, %arg1: i32) -> (i32, i32) {
    %c0_i32 = arith.constant 0 : i32
    %c0_i32_0 = arith.constant 0 : i32
    return %c0_i32, %arg1 : i32, i32
  }
  func.func @transform_2(%arg0: i32, %arg1: i32) -> (i32, i32) {
    %c0_i32 = arith.constant 0 : i32
    %c0_i32_0 = arith.constant 0 : i32
    return %c0_i32, %arg1 : i32, i32
  }
  func.func @transform_3(%arg0: i32, %arg1: i32) -> (i32, i32) {
    %c0_i32 = arith.constant 0 : i32
    %c0_i32_0 = arith.constant 0 : i32
    return %arg1, %c0_i32 : i32, i32
  }
  func.func @transform_4(%arg0: i32, %arg1: i32) -> (i32, i32) {
    %c0_i32 = arith.constant 0 : i32
    %c0_i32_0 = arith.constant 0 : i32
    %c0_i32_1 = arith.constant 0 : i32
    return %c0_i32, %c0_i32_0 : i32, i32
  }
  func.func @transform_5(%arg0: i32, %arg1: i32) -> (i32, i32) {
    %c0_i32 = arith.constant 0 : i32
    %c0_i32_0 = arith.constant 0 : i32
    return %arg0, %c0_i32 : i32, i32
  }
}

</mosaic_0001>

<bundles_post_ra>
// kernel: mlp_forward.1
= control target key start
LH: loop header
LB: loop body
LE: loop exit
PB: predicated region body
PF: predicated region fallthrough
CT: control target
= control target key end

     0   :  { %s1879_s0 = inlined_call_operand.vmem [shape: bf16[256,128], index: 0, kind: input, shape index: {}]   ;;  %s1880_s1 = inlined_call_operand.vmem [shape: bf16[128,256], index: 1, kind: input, shape index: {}]   ;;  %s1881_s2 = inlined_call_operand.vmem [shape: f32[1,256], index: 2, kind: input, shape index: {}]   ;;  %s1882_s3 = inlined_call_operand.vmem [shape: bf16[256,128], index: 3, kind: input, shape index: {}]   ;;  %s1883_s4 = inlined_call_operand.vmem [shape: f32[1,128], index: 4, kind: input, shape index: {}]   ;;  %s1884_s5 = inlined_call_operand.hbm [shape: f32[256,128], index: 5, kind: output, shape index: {}]  }
   0x1   :  { %1891 = sst [smem:[#allocation14_spill]] %s1880_s1 }
   0x2   :  { %10 = vsyncpa [#allocation5], 0 }
   0x3   :  { %12 = vsyncpa [#allocation5 + $0x1], 0  ;;  %s1565_s18 = smov 0   ;;  %s1567_s19 = smov 0  }
   0x4   :  { %s1569_s20 = smov 0   ;;  %s1571_s21 = smov 0  }
   0x5   :  { %s1573_s22 = smov 0   ;;  %s1575_s23 = smov 0  }
   0x6   :  { %s1577_s24 = smov 0   ;;  %s1579_s25 = smov 0  }
   0x7   :  { %s1581_s26 = smov 0   ;;  %s1583_s27 = smov 0  }
   0x8 LB: > { %1892 = sst [smem:[#allocation7_spill]] %s1509_s22  ;;  %s1132_s28 = sadd.s32 4294967295, %s1529_s27   ;;  %s1529_s27 = sphi %s1583_s27, %s18_s27   ;;  %s1525_s26 = sphi %s1581_s26, %s1910_s26   ;;  %s1521_s25 = sphi %s1579_s25, %s1909_s25   ;;  %s1517_s24 = sphi %s1577_s24, %s1908_s24   ;;  %s1513_s23 = sphi %s1575_s23, %s1907_s23   ;;  %s1509_s22 = sphi %s1573_s22, %s1906_s22   ;;  %s1505_s21 = sphi %s1571_s21, %s1905_s21   ;;  %s1501_s20 = sphi %s1569_s20, %s1913_s20   ;;  %s1497_s19 = sphi %s1567_s19, %s1912_s19   ;;  %s1493_s18 = sphi %s1565_s18, %s1911_s18  }
   0x9   : > { %1893 = sst [smem:[#allocation8_spill]] %s1521_s25  ;;  %s1133_s29 = sadd.s32 4294967294, %s1529_s27  }
   0xa   : > { %1894 = sst [smem:[#allocation9_spill]] %s1525_s26  ;;  %s27_s30 = sadd.s32 1, %s1521_s25 }
   0xb   : > { %s30_s6 = sadd.s32 1, %s1525_s26  ;;  %p28_p0 = scmp.ge.s32.totalorder %s27_s30, 2 }
   0xc   : > { %s63_s7 = sadd.s32 1, %s1509_s22  ;;  %p70_p1 = scmp.ne.s32.totalorder %s1509_s22, %s1505_s21 }
   0xd   : > { %p71_p2 = scmp.eq.s32.totalorder %s1529_s27, 0  ;;  %s1915_s30 = smov (%p28_p0, %s27_s30), 0 }
   0xe   : > { %1895 = sst [smem:[#allocation10_spill]] %s1915_s30  ;;  %s1917_s6 = smov (!%p28_p0, %s30_s6), %s1525_s26 }
   0xf   : > { %s60_s8 = ssub.s32 %s1521_s25, %s1915_s30  ;;  %p1628_p3 = por %p71_p2, %p70_p1 }
  0x10   : > { %p32_p4 = scmp.ge.s32.totalorder %s1917_s6, 2  ;;  %p61_p5 = scmp.eq.s32.totalorder %s60_s8, 0 }
  0x11   : > { %s162_s10 = sadd.s32 1, %s1501_s20  ;;  %p172_p6 = scmp.ne.s32.totalorder %s1501_s20, %s1497_s19 }
  0x12   : > { %s1919_s6 = smov (%p32_p4, %s1917_s6), 0  ;;  %p173_p7 = scmp.eq.s32.totalorder %s1132_s28, 3 }
  0x13   : > { %1897 = sst [smem:[#allocation11_spill]] %s1919_s6  ;;  %s159_s12 = ssub.s32 %s1525_s26, %s1919_s6 }
  0x14   : > { %s1638_s11 = scalar_select %p61_p5, %s1509_s22, %s63_s7  }
  0x15   : > { %p160_p8 = scmp.eq.s32.totalorder %s159_s12, 0  ;;  %p178_p9 = scmp.ne.s32.totalorder %s1497_s19, %s1493_s18 }
  0x16   : > { %1898 = sst [smem:[#allocation12_spill]] %s1638_s11  ;;  %p1644_p10 = por %p173_p7, %p172_p6 }
  0x17   : > { %p179_p11 = scmp.eq.s32.totalorder %s1133_s29, 3  ;;  %p1135_p13 = scmp.ge.s32.totalorder %s1529_s27, 4 }
  0x18   : > { %s1649_s14 = scalar_select %p160_p8, %s1501_s20, %s162_s10  }
  0x19   : > { %p1651_p12 = por %p179_p11, %p178_p9  ;;  %198 = sbr.rel (%p1135_p13) target bundleno = 50 (0x32), region = 20 }
  0x1a   : > { %1900 = sst [smem:[#allocation13_spill]] %s1649_s14 }
  0x1e   : > { %210 = sbr.rel (!%p1628_p3) target bundleno = 50 (0x32), region = 28  ;;  %s212_s16 = sand.u32 (%p1628_p3), 1, %s1509_s22  }
  0x1f   : > { %s1137_s17 = sshll.u32 (%p1628_p3), %s1521_s25, 2  ;;  %s1136_s28 = sshll.u32 (%p1628_p3), %s212_s16, 6 }
  0x20   : > { %s1902_s1 = sld [smem:[#allocation14_spill]] (%p1628_p3)  ;;  %s214_s9 = scalar_lea.vmem (%p1628_p3), [#allocation3], %s1136_s28 }
  0x26   : > { %s1663_s29 = scalar_lea.vmem %s1902_s1, %s1137_s17 }
  0x27   : > { %v233_v0 = vld [vmem:[%s1663_s29] sm:$0xf]  ;;  %v235_v1 = vld [vmem:[%s1663_s29 + $0x8] sm:$0xf]  ;;  %v237_v2 = vld [vmem:[%s1663_s29 + $0x10] sm:$0xf] }
  0x28   : > { %234 = vst [vmem:[%s214_s9] sm:$0xf] %v233_v0  ;;  %236 = vst [vmem:[%s214_s9 + $0x4] sm:$0xf] %v235_v1  ;;  %v239_v3 = vld [vmem:[%s1663_s29 + $0x18] sm:$0xf] }
  0x29   : > { %v241_v4 = vld [vmem:[%s1663_s29 + $0x20] sm:$0xf]  ;;  %238 = vst [vmem:[%s214_s9 + $0x8] sm:$0xf] %v237_v2  ;;  %240 = vst [vmem:[%s214_s9 + $0xc] sm:$0xf] %v239_v3 }
  0x2a   : > { %242 = vst [vmem:[%s214_s9 + $0x10] sm:$0xf] %v241_v4  ;;  %v243_v5 = vld [vmem:[%s1663_s29 + $0x28] sm:$0xf]  ;;  %v245_v6 = vld [vmem:[%s1663_s29 + $0x30] sm:$0xf] }
  0x2b   : > { %v247_v7 = vld [vmem:[%s1663_s29 + $0x38] sm:$0xf]  ;;  %244 = vst [vmem:[%s214_s9 + $0x14] sm:$0xf] %v243_v5  ;;  %246 = vst [vmem:[%s214_s9 + $0x18] sm:$0xf] %v245_v6 }
  0x2c   : > { %248 = vst [vmem:[%s214_s9 + $0x1c] sm:$0xf] %v247_v7  ;;  %v249_v8 = vld [vmem:[%s1663_s29 + $0x40] sm:$0xf]  ;;  %v251_v9 = vld [vmem:[%s1663_s29 + $0x48] sm:$0xf] }
  0x2d   : > { %v253_v10 = vld [vmem:[%s1663_s29 + $0x50] sm:$0xf]  ;;  %250 = vst [vmem:[%s214_s9 + $0x20] sm:$0xf] %v249_v8  ;;  %252 = vst [vmem:[%s214_s9 + $0x24] sm:$0xf] %v251_v9 }
  0x2e   : > { %254 = vst [vmem:[%s214_s9 + $0x28] sm:$0xf] %v253_v10  ;;  %v255_v11 = vld [vmem:[%s1663_s29 + $0x58] sm:$0xf]  ;;  %v257_v12 = vld [vmem:[%s1663_s29 + $0x60] sm:$0xf] }
  0x2f   : > { %v259_v13 = vld [vmem:[%s1663_s29 + $0x68] sm:$0xf]  ;;  %256 = vst [vmem:[%s214_s9 + $0x2c] sm:$0xf] %v255_v11  ;;  %258 = vst [vmem:[%s214_s9 + $0x30] sm:$0xf] %v257_v12 }
  0x30   : > { %260 = vst [vmem:[%s214_s9 + $0x34] sm:$0xf] %v259_v13  ;;  %v261_v14 = vld [vmem:[%s1663_s29 + $0x70] sm:$0xf]  ;;  %v263_v15 = vld [vmem:[%s1663_s29 + $0x78] sm:$0xf] }
  0x31   : > { %262 = vst [vmem:[%s214_s9 + $0x38] sm:$0xf] %v261_v14  ;;  %264 = vst [vmem:[%s214_s9 + $0x3c] sm:$0xf] %v263_v15 }
  0x32 PF: > { %p1138_p0 = scmp.ge.s32.totalorder %s1529_s27, 1  ;;  %p334_p1 = scmp.lt.s32.totalorder %s1529_s27, 5 }
  0x34   : > { %p335_p2 = pnand %p1138_p0, %p334_p1 }
  0x35   : > { %s341_s10 = sand.u32 (!%p335_p2), 1, %s1505_s21   ;;  %s1887_s12 = sand.u32 (!%p335_p2), 1, %s1497_s19  }
  0x36   : > { %338 = sbr.rel (%p335_p2) target bundleno = 599 (0x257), region = 77  ;;  %s1139_s16 = sshll.u32 (!%p335_p2), %s341_s10, 6 }
  0x37   : > { %s1140_s17 = sshll.u32 (!%p335_p2), %s1887_s12, 7  ;;  %s1141_s28 = sshll.u32 (!%p335_p2), %s1517_s24, 4 }
  0x38   : > { %p387_p3 = scmp.lt.s32.totalorder (!%p335_p2), %s1513_s23, 1  ;;  %p382_p4 = scmp.lt.s32.totalorder (!%p335_p2), %s1141_s28, 31 }
  0x39   : > { %s1143_s7 = sshll.u32 (!%p335_p2), %s1513_s23, 4  ;;  %s1707_s22 = scalar_lea.vmem (!%p335_p2), [#allocation3], %s1139_s16 }
  0x3a   : > { %p391_p5 = scmp.lt.s32.totalorder (!%p335_p2), %s1143_s7, 31  ;;  %s1709_s14 = scalar_lea.vmem (!%p335_p2), [#allocation4], %s1140_s17 }
  0x3b   : > { %s1691_s8 = scalar_select %p387_p3, %s1513_s23, 1 }
  0x3c   : > { %s1921_s28 = smov (!%p382_p4, %s1141_s28), 31  ;;  %s1923_s7 = smov (!%p391_p5, %s1143_s7), 31 }
  0x3d   : > { %s389_s1 = scalar_lea.vmem %s1881_s2, %s1691_s8  ;;  %s1142_s6 = sshll.u32 %s1921_s28, 2 }
  0x3e   : > { %s1700_s10 = scalar_lea.vmem %s1879_s0, %s1142_s6  ;;  %s1144_s12 = sshll.u32 %s1923_s7, 2 }
  0x3f   : > { %s1705_s11 = scalar_lea.vmem %s1882_s3, %s1144_s12  ;;  %p1145_p6 = scmp.ne.s32.totalorder %s1513_s23, 0 }
  0x41   : > { %401 = sbr.rel (%p1145_p6) target bundleno = 79 (0x4f), region = 85 }
  0x46   : > { %v1531_v16 = vmov 0.0  }
  0x47   : > { %402 = vst [vmem:[#allocation2 + $0x30] sm:$0xff] %v1531_v16  ;;  %403 = vst [vmem:[#allocation2] sm:$0xff] %v1531_v16 }
  0x48   : > { %404 = vst [vmem:[#allocation2 + $0x58] sm:$0xff] %v1531_v16  ;;  %405 = vst [vmem:[#allocation2 + $0x18] sm:$0xff] %v1531_v16 }
  0x49   : > { %406 = vst [vmem:[#allocation2 + $0x50] sm:$0xff] %v1531_v16  ;;  %407 = vst [vmem:[#allocation2 + $0x68] sm:$0xff] %v1531_v16 }
  0x4a   : > { %408 = vst [vmem:[#allocation2 + $0x8] sm:$0xff] %v1531_v16  ;;  %409 = vst [vmem:[#allocation2 + $0x48] sm:$0xff] %v1531_v16 }
  0x4b   : > { %410 = vst [vmem:[#allocation2 + $0x40] sm:$0xff] %v1531_v16  ;;  %411 = vst [vmem:[#allocation2 + $0x20] sm:$0xff] %v1531_v16 }
  0x4c   : > { %412 = vst [vmem:[#allocation2 + $0x10] sm:$0xff] %v1531_v16  ;;  %413 = vst [vmem:[#allocation2 + $0x38] sm:$0xff] %v1531_v16 }
  0x4d   : > { %414 = vst [vmem:[#allocation2 + $0x60] sm:$0xff] %v1531_v16  ;;  %415 = vst [vmem:[#allocation2 + $0x70] sm:$0xff] %v1531_v16 }
  0x4e   : > { %416 = vst [vmem:[#allocation2 + $0x78] sm:$0xff] %v1531_v16  ;;  %417 = vst [vmem:[#allocation2 + $0x28] sm:$0xff] %v1531_v16 }
  0x4f PF: > { %v1365_v17 = vld [vmem:[%s1707_s22 + $0x38] sm:$0xff]   ;;  %v1366_v18 = vld [vmem:[%s1707_s22 + $0x30] sm:$0xff]   ;;  %v1367_v19 = vld [vmem:[%s1707_s22 + $0x28] sm:$0xff]   ;;  %p1171_p7 = scmp.ne.s32.totalorder %s1513_s23, 1 }
  0x50   : > { %1211 = vmatprep.subr.bf16.mxu0 %v1365_v17  ;;  %v1368_v20 = vld [vmem:[%s1707_s22 + $0x20] sm:$0xff]   ;;  %v1369_v22 = vld [vmem:[%s1707_s22 + $0x18] sm:$0xff]   ;;  %v1370_v23 = vld [vmem:[%s1707_s22 + $0x10] sm:$0xff]  }
  0x51   : > { %1212 = vmatpush3.bf16.msra.mxu0 %v1365_v17  ;;  %v1373_v21 = vld [vmem:[%s1700_s10] sm:$0xff]   ;;  %v1371_v24 = vld [vmem:[%s1707_s22 + $0x8] sm:$0xff]   ;;  %v1375_v27 = vld [vmem:[%s1700_s10 + $0x10] sm:$0xff]  }
  0x52   : > { %1213 = vmatprep.subr.bf16.mxu0 %v1366_v18  ;;  %1227 = vmatprep.mubr.bf16.mxu0 %v1373_v21  ;;  %v1372_v25 = vld [vmem:[%s1707_s22] sm:$0xff]   ;;  %v1374_v26 = vld [vmem:[%s1700_s10 + $0x8] sm:$0xff]   ;;  %v1376_v28 = vld [vmem:[%s1700_s10 + $0x18] sm:$0xff]  }
  0x53   : > { %v1377_v29 = vld [vmem:[%s1700_s10 + $0x20] sm:$0xff]   ;;  %v1378_v30 = vld [vmem:[%s1700_s10 + $0x28] sm:$0xff]   ;;  %v1379_v31 = vld [vmem:[%s1700_s10 + $0x30] sm:$0xff]  }
  0x54   : > { %v1380_v32 = vld [vmem:[%s1700_s10 + $0x38] sm:$0xff]   ;;  %v1382_v34 = vld [vmem:[%s1705_s11 + $0x30] sm:$0xff]   ;;  %v1383_v35 = vld [vmem:[%s1705_s11 + $0x28] sm:$0xff]  }
  0x55   : > { %1214 = vmatpush3.bf16.msra.mxu0 %v1366_v18  ;;  %v1381_v33 = vld [vmem:[%s1705_s11 + $0x38] sm:$0xff]   ;;  %v1384_v36 = vld [vmem:[%s1705_s11 + $0x20] sm:$0xff]   ;;  %v1386_v38 = vld [vmem:[%s1705_s11 + $0x10] sm:$0xff]  }
  0x56   : > { %1215 = vmatprep.subr.bf16.mxu0 %v1367_v19  ;;  %1243 = vmatprep.subr.bf16.mxu1 %v1381_v33  ;;  %v1385_v37 = vld [vmem:[%s1705_s11 + $0x18] sm:$0xff]   ;;  %v1387_v39 = vld [vmem:[%s1705_s11 + $0x8] sm:$0xff]   ;;  %v1388_v40 = vld [vmem:[%s1705_s11] sm:$0xff]  }
  0x57   : > { %1244 = vmatpush3.bf16.msra.mxu1 %v1381_v33  ;;  %v1741_v41 = vld [vmem:[%s389_s1] ss:$0 sm:$0xff] }
  0x58   : > { %1245 = vmatprep.subr.bf16.mxu1 %v1382_v34 }
  0x59   : > { %1216 = vmatpush3.bf16.msra.mxu0 %v1367_v19 }
  0x5a   : > { %1217 = vmatprep.subr.bf16.mxu0 %v1368_v20 }
  0x5b   : > { %1246 = vmatpush3.bf16.msra.mxu1 %v1382_v34 }
  0x5c   : > { %1247 = vmatprep.subr.bf16.mxu1 %v1383_v35 }
  0x5d   : > { %1218 = vmatpush3.bf16.msra.mxu0 %v1368_v20 }
  0x5e   : > { %1219 = vmatprep.subr.bf16.mxu0 %v1369_v22 }
  0x5f   : > { %1248 = vmatpush3.bf16.msra.mxu1 %v1383_v35 }
  0x60   : > { %1249 = vmatprep.subr.bf16.mxu1 %v1384_v36 }
  0x61   : > { %1220 = vmatpush3.bf16.msra.mxu0 %v1369_v22 }
  0x62   : > { %1221 = vmatprep.subr.bf16.mxu0 %v1370_v23 }
  0x63   : > { %1250 = vmatpush3.bf16.msra.mxu1 %v1384_v36 }
  0x64   : > { %1251 = vmatprep.subr.bf16.mxu1 %v1385_v37 }
  0x65   : > { %1222 = vmatpush3.bf16.msra.mxu0 %v1370_v23 }
  0x66   : > { %1223 = vmatprep.subr.bf16.mxu0 %v1371_v24 }
  0x67   : > { %1252 = vmatpush3.bf16.msra.mxu1 %v1385_v37 }
  0x68   : > { %1253 = vmatprep.subr.bf16.mxu1 %v1386_v38 }
  0x69   : > { %1224 = vmatpush3.bf16.msra.mxu0 %v1371_v24 }
  0x6a   : > { %1225 = vmatprep.subr.bf16.mxu0 %v1372_v25 }
  0x6b   : > { %1254 = vmatpush3.bf16.msra.mxu1 %v1386_v38 }
  0x6c   : > { %1255 = vmatprep.subr.bf16.mxu1 %v1387_v39 }
  0x6d   : > { %1226 = vmatpush3.bf16.msra.mxu0 %v1372_v25 }
  0x6f   : > { %1256 = vmatpush3.bf16.msra.mxu1 %v1387_v39 }
  0x70   : > { %1228 = vmatmul.mubr.bf16.vlgmr.msra.gmra.mxu0 %v1374_v26  ;;  %1257 = vmatprep.subr.bf16.mxu1 %v1388_v40 }
  0x71   : > { %1231 = vmatprep.mubr.bf16.mxu0 %v1375_v27 }
  0x73   : > { %1258 = vmatpush3.bf16.msra.mxu1 %v1388_v40 }
  0x78   : > { %1232 = vmatmul.mubr.bf16.gmra.mxu0 %v1376_v28 }
  0x79   : > { %1235 = vmatprep.mubr.bf16.mxu0 %v1377_v29 }
  0x80   : > { %1236 = vmatmul.mubr.bf16.gmra.mxu0 %v1378_v30 }
  0x81   : > { %1239 = vmatprep.mubr.bf16.mxu0 %v1379_v31 }
  0x88   : > { %1240 = vmatmul.mubr.bf16.gmra.mxu0 %v1380_v32 }
 0x130   : > { %v1229_v42 = vpop.f32.mrf.mxu0 }
 0x131   : > { %v596_v43 = vadd.f32 %v1229_v42, %v1741_v41 }
 0x132   : > { %v587_v44 = vpop.f32.mrf.mxu0 }
 0x133   : > { %v668_v45 = vmul.f32 0.70710677, %v596_v43  ;;  %v588_v46 = vadd.f32 %v1741_v41, %v587_v44  ;;  %v652_v22 = vmul.f32 0.5, %v596_v43 }
 0x134   : > { %v1230_v47 = vpop.f32.mrf.mxu0 }
 0x135   : > { %v666_v48 = vmul.f32 0.70710677, %v588_v46  ;;  %v599_v49 = vadd.f32 %v1230_v47, %v1741_v41  ;;  %1389 = verf.f32 %v668_v45  ;;  %v650_v23 = vmul.f32 0.5, %v588_v46 }
 0x136   : > { %v590_v50 = vpop.f32.mrf.mxu0 }
 0x137   : > { %v669_v51 = vmul.f32 0.70710677, %v599_v49  ;;  %v591_v52 = vadd.f32 %v1741_v41, %v590_v50  ;;  %1391 = verf.f32 %v666_v48  ;;  %v653_v19 = vmul.f32 0.5, %v599_v49 }
 0x138   : > { %v1233_v53 = vpop.f32.mrf.mxu0 }
 0x139   : > { %1393 = verf.f32 %v669_v51  ;;  %v667_v54 = vmul.f32 0.70710677, %v591_v52  ;;  %v1748_v55 = vadd.f32 %v1233_v53, %v1741_v41  ;;  %v651_v26 = vmul.f32 0.5, %v591_v52 }
 0x13a   : > { %v603_v56 = vpop.f32.mrf.mxu0 }
 0x13b   : > { %1395 = verf.f32 %v667_v54  ;;  %v1751_v57 = vadd.f32 %v1741_v41, %v603_v56  ;;  %v672_v58 = vmul.f32 0.70710677, %v1748_v55 }
 0x13c   : > { %v1234_v59 = vpop.f32.mrf.mxu0 }
 0x13d   : > { %v670_v60 = vmul.f32 0.70710677, %v1751_v57  ;;  %v615_v61 = vadd.f32 %v1234_v59, %v1741_v41  ;;  %v654_v49 = vmul.f32 0.5, %v1751_v57 }
 0x13e   : > { %v606_v62 = vpop.f32.mrf.mxu0 }
 0x13f   : > { %1397 = verf.f32 %v670_v60  ;;  %v673_v63 = vmul.f32 0.70710677, %v615_v61  ;;  %v607_v0 = vadd.f32 %v1741_v41, %v606_v62  ;;  %v657_v50 = vmul.f32 0.5, %v615_v61 }
 0x140   : > { %1399 = verf.f32 %v672_v58  ;;  %v1237_v1 = vpop.f32.mrf.mxu0  ;;  %v656_v58 = vmul.f32 0.5, %v1748_v55 }
 0x141   : > { %1401 = verf.f32 %v673_v63  ;;  %v671_v2 = vmul.f32 0.70710677, %v607_v0  ;;  %v1758_v3 = vadd.f32 %v1237_v1, %v1741_v41  ;;  %v655_v51 = vmul.f32 0.5, %v607_v0 }
 0x142   : > { %v619_v4 = vpop.f32.mrf.mxu0  ;;  %v1390_v6 = vpop.eup %1389 }
 0x143   : > { %1403 = verf.f32 %v671_v2  ;;  %v676_v5 = vmul.f32 0.70710677, %v1758_v3  ;;  %v1762_v7 = vadd.f32 %v1741_v41, %v619_v4  ;;  %v700_v18 = vadd.f32 1.0, %v1390_v6 }
 0x144   : > { %v1238_v8 = vpop.f32.mrf.mxu0  ;;  %v1392_v9 = vpop.eup %1391 }
 0x145   : > { %v1765_v10 = vadd.f32 %v1238_v8, %v1741_v41  ;;  %v674_v12 = vmul.f32 0.70710677, %v1762_v7  ;;  %1405 = verf.f32 %v676_v5  ;;  %v698_v21 = vadd.f32 1.0, %v1392_v9 }
 0x146   : > { %v1394_v11 = vpop.eup %1393  ;;  %v622_v13 = vpop.f32.mrf.mxu0  ;;  %v716_v32 = vmul.f32 %v700_v18, %v652_v22  ;;  %v658_v6 = vmul.f32 0.5, %v1762_v7 }
 0x147   : > { %v701_v14 = vadd.f32 1.0, %v1394_v11  ;;  %v677_v15 = vmul.f32 0.70710677, %v1765_v10  ;;  %v1770_v16 = vadd.f32 %v1741_v41, %v622_v13  ;;  %1407 = verf.f32 %v674_v12 }
 0x148   : > { %v1396_v17 = vpop.eup %1395  ;;  %v1241_v20 = vpop.f32.mrf.mxu0  ;;  %v714_v34 = vmul.f32 %v698_v21, %v650_v23  ;;  %v661_v55 = vmul.f32 0.5, %v1765_v10  ;;  %v660_v12 = vmul.f32 0.5, %v1758_v3 }
 0x149   : > { %1409 = verf.f32 %v677_v15  ;;  %v675_v24 = vmul.f32 0.70710677, %v1770_v16  ;;  %v717_v25 = vmul.f32 %v701_v14, %v653_v19  ;;  %v1774_v27 = vadd.f32 %v1241_v20, %v1741_v41 }
 0x14a   : > { %v635_v28 = vpop.f32.mrf.mxu0  ;;  %v699_v29 = vadd.f32 1.0, %v1396_v17  ;;  %v659_v9 = vmul.f32 0.5, %v1770_v16 }
 0x14b   : > { %1411 = verf.f32 %v675_v24  ;;  %v1777_v30 = vadd.f32 %v1741_v41, %v635_v28  ;;  %v680_v37 = vmul.f32 0.70710677, %v1774_v27  ;;  %v747_v44 = vpack.c.bf16 %v717_v25, %v716_v32 }
 0x14c   : > { %v1398_v31 = vpop.eup %1397  ;;  %v1242_v33 = vpop.f32.mrf.mxu0  ;;  %v715_v35 = vmul.f32 %v699_v29, %v651_v26  ;;  %v664_v3 = vmul.f32 0.5, %v1774_v27 }
 0x14d   : > { %v1400_v36 = vpop.eup %1399  ;;  %v678_v38 = vmul.f32 0.70710677, %v1777_v30  ;;  %v647_v40 = vadd.f32 %v1242_v33, %v1741_v41  ;;  %v702_v45 = vadd.f32 1.0, %v1398_v31  ;;  %v662_v10 = vmul.f32 0.5, %v1777_v30 }
 0x14e   : > { %v1402_v39 = vpop.eup %1401  ;;  %v638_v42 = vpop.f32.mrf.mxu0  ;;  %v746_v43 = vpack.c.bf16 %v715_v35, %v714_v34  ;;  %v704_v53 = vadd.f32 1.0, %v1400_v36  ;;  %v732_v36 = vld [vmem:[#allocation2 + $0x58] sm:$0xff] }
 0x14f   : > { %v705_v46 = vadd.f32 1.0, %v1402_v39  ;;  %1413 = verf.f32 %v678_v38  ;;  %v639_v47 = vadd.f32 %v1741_v41, %v638_v42  ;;  %v681_v52 = vmul.f32 0.70710677, %v647_v40  ;;  %v730_v38 = vld [vmem:[#allocation2 + $0x30] sm:$0xff]  ;;  %v733_v42 = vld [vmem:[#allocation2 + $0x18] sm:$0xff] }
 0x150   : > { %v1404_v48 = vpop.eup %1403  ;;  %1259 = vmatprep.mubr.bf16.mxu1 %v746_v43  ;;  %1415 = verf.f32 %v680_v37  ;;  %v718_v59 = vmul.f32 %v702_v45, %v654_v49  ;;  %v720_v1 = vmul.f32 %v704_v53, %v656_v58  ;;  %v665_v25 = vmul.f32 0.5, %v647_v40  ;;  %v734_v49 = vld [vmem:[#allocation2 + $0x50] sm:$0xff] }
 0x151   : > { %v703_v54 = vadd.f32 1.0, %v1404_v48  ;;  %v679_v56 = vmul.f32 0.70710677, %v639_v47  ;;  %1260 = vmatmul.mubr.bf16.vlgmr.msra.gmra.mxu1 %v747_v44  ;;  %1417 = verf.f32 %v681_v52  ;;  %v721_v60 = vmul.f32 %v705_v46, %v657_v50  ;;  %v731_v44 = vld [vmem:[#allocation2] sm:$0xff]  ;;  %v736_v46 = vld [vmem:[#allocation2 + $0x8] sm:$0xff] }
 0x152   : > { %v1406_v41 = vpop.eup %1405  ;;  %v663_v26 = vmul.f32 0.5, %v639_v47  ;;  %v737_v52 = vld [vmem:[#allocation2 + $0x48] sm:$0xff] }
 0x153   : > { %v719_v62 = vmul.f32 %v703_v54, %v655_v51  ;;  %1419 = verf.f32 %v679_v56  ;;  %v749_v4 = vpack.c.bf16 %v721_v60, %v720_v1  ;;  %v708_v8 = vadd.f32 1.0, %v1406_v41  ;;  %v735_v56 = vld [vmem:[#allocation2 + $0x68] sm:$0xff]  ;;  %v740_v60 = vld [vmem:[#allocation2 + $0x10] sm:$0xff] }
 0x154   : > { %v1408_v63 = vpop.eup %1407 }
 0x155   : > { %v748_v57 = vpack.c.bf16 %v719_v62, %v718_v59  ;;  %v706_v0 = vadd.f32 1.0, %v1408_v63  ;;  %v724_v18 = vmul.f32 %v708_v8, %v660_v12  ;;  %v738_v63 = vld [vmem:[#allocation2 + $0x40] sm:$0xff]  ;;  %v744_v8 = vld [vmem:[#allocation2 + $0x78] sm:$0xff] }
 0x156   : > { %v1410_v61 = vpop.eup %1409 }
 0x157   : > { %v709_v2 = vadd.f32 1.0, %v1410_v61  ;;  %1263 = vmatprep.mubr.bf16.mxu1 %v748_v57  ;;  %v722_v13 = vmul.f32 %v706_v0, %v658_v6  ;;  %v741_v61 = vld [vmem:[#allocation2 + $0x38] sm:$0xff] }
 0x158   : > { %v1412_v5 = vpop.eup %1411 }
 0x159   : > { %v707_v11 = vadd.f32 1.0, %v1412_v5  ;;  %1264 = vmatmul.mubr.bf16.gmra.mxu1 %v749_v4  ;;  %v725_v14 = vmul.f32 %v709_v2, %v661_v55  ;;  %v739_v4 = vld [vmem:[#allocation2 + $0x20] sm:$0xff] }
 0x15b   : > { %v723_v15 = vmul.f32 %v707_v11, %v659_v9  ;;  %v751_v7 = vpack.c.bf16 %v725_v14, %v724_v18  ;;  %v742_v11 = vld [vmem:[#allocation2 + $0x60] sm:$0xff]  ;;  %v745_v14 = vld [vmem:[#allocation2 + $0x28] sm:$0xff]  ;;  %v743_v18 = vld [vmem:[#allocation2 + $0x70] sm:$0xff] }
 0x15c   : > { %v1414_v17 = vpop.eup %1413 }
 0x15d   : > { %v750_v19 = vpack.c.bf16 %v723_v15, %v722_v13  ;;  %v1416_v20 = vpop.eup %1415  ;;  %v710_v22 = vadd.f32 1.0, %v1414_v17 }
 0x15e   : > { %v1418_v21 = vpop.eup %1417  ;;  %v712_v16 = vadd.f32 1.0, %v1416_v20 }
 0x15f   : > { %1267 = vmatprep.mubr.bf16.mxu1 %v750_v19  ;;  %v713_v24 = vadd.f32 1.0, %v1418_v21  ;;  %v726_v29 = vmul.f32 %v710_v22, %v662_v10 }
 0x160   : > { %v1420_v23 = vpop.eup %1419  ;;  %v728_v33 = vmul.f32 %v712_v16, %v664_v3 }
 0x161   : > { %v711_v28 = vadd.f32 1.0, %v1420_v23  ;;  %1268 = vmatmul.mubr.bf16.gmra.mxu1 %v751_v7  ;;  %v729_v31 = vmul.f32 %v713_v24, %v665_v25 }
 0x163   : > { %v727_v32 = vmul.f32 %v711_v28, %v663_v26  ;;  %v753_v35 = vpack.c.bf16 %v729_v31, %v728_v33 }
 0x165   : > { %v752_v34 = vpack.c.bf16 %v727_v32, %v726_v29 }
 0x167   : > { %1271 = vmatprep.mubr.bf16.mxu1 %v752_v34 }
 0x169   : > { %1272 = vmatmul.mubr.bf16.gmra.mxu1 %v753_v35 }
 0x211   : > { %v1261_v37 = vpop.f32.mrf.mxu1 }
 0x212   : > { %v917_v30 = vadd.f32 %v1261_v37, %v732_v36 }
 0x213   : > { %v852_v39 = vpop.f32.mrf.mxu1 }
 0x214   : > { %933 = vst [vmem:[#allocation2 + $0x58] sm:$0xff] %v917_v30  ;;  %v915_v40 = vadd.f32 %v852_v39, %v730_v38 }
 0x215   : > { %v1262_v43 = vpop.f32.mrf.mxu1 }
 0x216   : > { %931 = vst [vmem:[#allocation2 + $0x30] sm:$0xff] %v915_v40  ;;  %v918_v27 = vadd.f32 %v1262_v43, %v733_v42 }
 0x217   : > { %v855_v45 = vpop.f32.mrf.mxu1 }
 0x218   : > { %934 = vst [vmem:[#allocation2 + $0x18] sm:$0xff] %v918_v27  ;;  %v916_v47 = vadd.f32 %v855_v45, %v731_v44 }
 0x219   : > { %v1265_v48 = vpop.f32.mrf.mxu1 }
 0x21a   : > { %932 = vst [vmem:[#allocation2] sm:$0xff] %v916_v47  ;;  %v921_v50 = vadd.f32 %v1265_v48, %v736_v46 }
 0x21b   : > { %v868_v51 = vpop.f32.mrf.mxu1 }
 0x21c   : > { %937 = vst [vmem:[#allocation2 + $0x8] sm:$0xff] %v921_v50  ;;  %v919_v53 = vadd.f32 %v868_v51, %v734_v49 }
 0x21d   : > { %v1266_v54 = vpop.f32.mrf.mxu1 }
 0x21e   : > { %935 = vst [vmem:[#allocation2 + $0x50] sm:$0xff] %v919_v53  ;;  %v922_v58 = vadd.f32 %v1266_v54, %v737_v52 }
 0x21f   : > { %v871_v59 = vpop.f32.mrf.mxu1 }
 0x220   : > { %938 = vst [vmem:[#allocation2 + $0x48] sm:$0xff] %v922_v58  ;;  %v920_v62 = vadd.f32 %v871_v59, %v735_v56 }
 0x221   : > { %v1269_v41 = vpop.f32.mrf.mxu1 }
 0x222   : > { %936 = vst [vmem:[#allocation2 + $0x68] sm:$0xff] %v920_v62  ;;  %v925_v1 = vadd.f32 %v1269_v41, %v740_v60 }
 0x223   : > { %v884_v57 = vpop.f32.mrf.mxu1 }
 0x224   : > { %941 = vst [vmem:[#allocation2 + $0x10] sm:$0xff] %v925_v1  ;;  %v923_v0 = vadd.f32 %v884_v57, %v738_v63 }
 0x225   : > { %v1270_v2 = vpop.f32.mrf.mxu1 }
 0x226   : > { %939 = vst [vmem:[#allocation2 + $0x40] sm:$0xff] %v923_v0  ;;  %v926_v5 = vadd.f32 %v1270_v2, %v741_v61 }
 0x227   : > { %v887_v6 = vpop.f32.mrf.mxu1 }
 0x228   : > { %942 = vst [vmem:[#allocation2 + $0x38] sm:$0xff] %v926_v5  ;;  %v924_v55 = vadd.f32 %v887_v6, %v739_v4 }
 0x229   : > { %v1273_v9 = vpop.f32.mrf.mxu1 }
 0x22a   : > { %940 = vst [vmem:[#allocation2 + $0x20] sm:$0xff] %v924_v55  ;;  %v929_v12 = vadd.f32 %v1273_v9, %v744_v8 }
 0x22b   : > { %v900_v13 = vpop.f32.mrf.mxu1 }
 0x22c   : > { %945 = vst [vmem:[#allocation2 + $0x78] sm:$0xff] %v929_v12  ;;  %v927_v15 = vadd.f32 %v900_v13, %v742_v11 }
 0x22d   : > { %v1274_v17 = vpop.f32.mrf.mxu1 }
 0x22e   : > { %943 = vst [vmem:[#allocation2 + $0x60] sm:$0xff] %v927_v15  ;;  %v930_v19 = vadd.f32 %v1274_v17, %v745_v14  ;;  %950 = sbr.rel (%p1171_p7) target bundleno = 574 (0x23e), region = 89 }
 0x22f   : > { %v903_v20 = vpop.f32.mrf.mxu1 }
 0x230   : > { %946 = vst [vmem:[#allocation2 + $0x28] sm:$0xff] %v930_v19  ;;  %v928_v21 = vadd.f32 %v903_v20, %v743_v18 }
 0x232   : > { %944 = vst [vmem:[#allocation2 + $0x70] sm:$0xff] %v928_v21 }
 0x233   : > { %v951_v22 = vld [vmem:[#allocation2 + $0x30] sm:$0xff]  ;;  %v1172_v7 = vld [vmem:[%s1883_s4] ss:$0 sm:$0xff]  ;;  %v953_v16 = vld [vmem:[#allocation2 + $0x58] sm:$0xff] }
 0x234   : > { %v952_v23 = vld [vmem:[#allocation2] sm:$0xff]  ;;  %v974_v10 = vadd.f32 %v1172_v7, %v951_v22  ;;  %v954_v25 = vld [vmem:[#allocation2 + $0x18] sm:$0xff]  ;;  %v955_v26 = vld [vmem:[#allocation2 + $0x50] sm:$0xff]  ;;  %v976_v28 = vadd.f32 %v1172_v7, %v953_v16 }
 0x235   : > { %v975_v24 = vadd.f32 %v1172_v7, %v952_v23  ;;  %v977_v3 = vadd.f32 %v1172_v7, %v954_v25  ;;  %v978_v29 = vadd.f32 %v1172_v7, %v955_v26  ;;  %v956_v31 = vld [vmem:[#allocation2 + $0x68] sm:$0xff]  ;;  %v959_v37 = vld [vmem:[#allocation2 + $0x40] sm:$0xff]  ;;  %v961_v30 = vld [vmem:[#allocation2 + $0x10] sm:$0xff] }
 0x236   : > { %v957_v32 = vld [vmem:[#allocation2 + $0x8] sm:$0xff]  ;;  %990 = vst [vmem:[%s1709_s14] sm:$0xff] %v974_v10  ;;  %v979_v34 = vadd.f32 %v1172_v7, %v956_v31  ;;  %v960_v38 = vld [vmem:[#allocation2 + $0x20] sm:$0xff]  ;;  %992 = vst [vmem:[%s1709_s14 + $0x10] sm:$0xff] %v976_v28  ;;  %v982_v39 = vadd.f32 %v1172_v7, %v959_v37  ;;  %v984_v40 = vadd.f32 %v1172_v7, %v961_v30 }
 0x237   : > { %v958_v33 = vld [vmem:[#allocation2 + $0x48] sm:$0xff]  ;;  %991 = vst [vmem:[%s1709_s14 + $0x8] sm:$0xff] %v975_v24  ;;  %v980_v35 = vadd.f32 %v1172_v7, %v957_v32  ;;  %993 = vst [vmem:[%s1709_s14 + $0x18] sm:$0xff] %v977_v3  ;;  %v983_v42 = vadd.f32 %v1172_v7, %v960_v38  ;;  %v962_v43 = vld [vmem:[#allocation2 + $0x38] sm:$0xff] }
 0x238   : > { %v981_v36 = vadd.f32 %v1172_v7, %v958_v33  ;;  %994 = vst [vmem:[%s1709_s14 + $0x20] sm:$0xff] %v978_v29  ;;  %v963_v44 = vld [vmem:[#allocation2 + $0x60] sm:$0xff]  ;;  %995 = vst [vmem:[%s1709_s14 + $0x28] sm:$0xff] %v979_v34  ;;  %v985_v45 = vadd.f32 %v1172_v7, %v962_v43  ;;  %v965_v48 = vld [vmem:[#allocation2 + $0x78] sm:$0xff] }
 0x239   : > { %v964_v27 = vld [vmem:[#allocation2 + $0x70] sm:$0xff]  ;;  %996 = vst [vmem:[%s1709_s14 + $0x30] sm:$0xff] %v980_v35  ;;  %v986_v46 = vadd.f32 %v1172_v7, %v963_v44  ;;  %v966_v49 = vld [vmem:[#allocation2 + $0x28] sm:$0xff]  ;;  %998 = vst [vmem:[%s1709_s14 + $0x40] sm:$0xff] %v982_v39  ;;  %v988_v50 = vadd.f32 %v1172_v7, %v965_v48 }
 0x23a   : > { %997 = vst [vmem:[%s1709_s14 + $0x38] sm:$0xff] %v981_v36  ;;  %v987_v47 = vadd.f32 %v1172_v7, %v964_v27  ;;  %999 = vst [vmem:[%s1709_s14 + $0x48] sm:$0xff] %v983_v42  ;;  %v989_v51 = vadd.f32 %v1172_v7, %v966_v49 }
 0x23b   : > { %1000 = vst [vmem:[%s1709_s14 + $0x50] sm:$0xff] %v984_v40  ;;  %1001 = vst [vmem:[%s1709_s14 + $0x58] sm:$0xff] %v985_v45 }
 0x23c   : > { %1002 = vst [vmem:[%s1709_s14 + $0x60] sm:$0xff] %v986_v46  ;;  %1003 = vst [vmem:[%s1709_s14 + $0x68] sm:$0xff] %v987_v47 }
 0x23d   : > { %1004 = vst [vmem:[%s1709_s14 + $0x70] sm:$0xff] %v988_v50  ;;  %1005 = vst [vmem:[%s1709_s14 + $0x78] sm:$0xff] %v989_v51 }
 0x23e PF: > { %s1178_s23 = sshll.u32 %s1517_s24, 11  ;;  %s1020_s12 = sshll.u32 %s1709_s14, 4  ;;  %s1818_s12 = int_to_ptr.vmem [resolvable:$true] %s1020_s12 }
 0x23f   : > { %s1815_s11 = scalar_lea.hbm %s1884_s5, %s1178_s23  ;;  %s1903_s16 = sand.u32 1, %s1497_s19  }
 0x240   : > { %s1822_s17 = scalar_lea.sflag [#allocation5], %s1903_s16  ;;  %s1421_s28 = scalar_lea.vmem %s1818_s12, 2048 }
 0x241   : > { %p1422_p8 = scmp.ne.s32.totalorder %s1818_s12, %s1421_s28  ;;  %s1532_s24 = smov [#allocation4]  }
 0x242   : > { %s1425_s7 = sshll.u32 %s1532_s24, 4  ;;  %s1426_s7 = int_to_ptr.vmem [resolvable:$false] %s1425_s7 }
 0x243   : > { %p1423_p9 = pnand %p1422_p8, %p1644_p10  ;;  %s1427_s8 = scalar_lea.vmem %s1426_s7, 4096 }
 0x244   : > { %p1428_p13 = scmp.lt.s32.totalorder %s1818_s12, %s1426_s7  ;;  %p1429_p0 = scmp.lt.s32.totalorder %s1427_s8, %s1421_s28 }
 0x245   : > { %p1424_p11 = pneg %p1423_p9 }
 0x246   : > { %p1430_p1 = por %p1429_p0, %p1428_p13 }
 0x248   : > { %p1431_p2 = pnand %p1430_p1, %p1424_p11 }
 0x24a   : > { %1434 = shalt.err (!%p1431_p2)
}
 0x24b   : > { %s1435_s14 = scalar_lea.hbm %s1815_s11, 2048  ;;  %s1439_s21 = scalar_lea.hbm %s1884_s5, 4096 }
 0x24c   : > { %p1436_p3 = scmp.ne.s32.totalorder %s1815_s11, %s1435_s14  ;;  %p1440_p6 = scmp.lt.s32.totalorder %s1815_s11, %s1884_s5 }
 0x24d   : > { %p1441_p7 = scmp.lt.s32.totalorder %s1439_s21, %s1435_s14 }
 0x24e   : > { %p1437_p4 = pnand %p1436_p3, %p1644_p10 }
 0x24f   : > { %p1442_p8 = por %p1441_p7, %p1440_p6 }
 0x250   : > { %p1438_p5 = pneg %p1437_p4 }
 0x252   : > { %p1443_p9 = pnand %p1442_p8, %p1438_p5 }
 0x254   : > { %1446 = shalt.err (!%p1443_p9)
}
 0x255   : > { %s1533_s25 = smov 128   ;;  %s1534_s1 = smov 8  }
 0x256   : > { %1275 = dma.vmem_to_hbm [thread:$0]  (%p1644_p10), %s1818_s12, 2048, %s1815_s11, %s1822_s17, %s1533_s25, %s1533_s25, %s1534_s1  }
 0x257 PF: > { %p1281_p11 = scmp.ge.s32.totalorder %s1529_s27, 2  ;;  %s1035_s26 = sand.u32 1, %s1493_s18  }
 0x258   : > { %s1036_s23 = scalar_lea.sflag [#allocation5], %s1035_s26 }
 0x259   : > { %p1278_p13 = pnand %p1281_p11, %p1651_p12 }
 0x25b   : > { %p1279_p0 = pneg %p1278_p13 }
 0x25d   : > { %1488 = dma.done.wait (%p1279_p0), %s1036_s23, 2048  }
 0x25e   : > { %1490 = vsyncadd (%p1279_p0), %s1036_s23, 4294965248  ;;  %s18_s27 = sadd.s32 1, %s1529_s27   ;;  %s1904_s30 = sld [smem:[#allocation13_spill]] }
 0x25f   : > { %p15_p1 = scmp.ge.s32.totalorder %s18_s27, 6   ;;  %s1905_s21 = sld [smem:[#allocation7_spill]] }
 0x260   : > { %s1906_s22 = sld [smem:[#allocation12_spill]]  ;;  %s1911_s18 = smov %s1497_s19 }
 0x261   : > { %s1907_s23 = sld [smem:[#allocation8_spill]]  ;;  %s1912_s19 = smov %s1501_s20 }
 0x262   : > { %s1908_s24 = sld [smem:[#allocation9_spill]]  ;;  %17 = sbr.rel (!%p15_p1) target bundleno = 8 (0x8), region = 138 }
 0x263   : > { %s1909_s25 = sld [smem:[#allocation10_spill]] }
 0x264   : > { %s1910_s26 = sld [smem:[#allocation11_spill]]  ;;  %s1913_s20 = smov %s1904_s30 }
 0x267   :  { %1041 = vsyncpa [#allocation5], 1 }
 0x268   :  { %1043 = vsyncpa [#allocation5 + $0x1], 1 }

</bundles_post_ra>
